<compile_context>
chip_gen: v6e
topology: v6e:2x2x1
jax: 0.10.0
libtpu: 0.0.40
codegen_flags: <defaults>
</compile_context>

<pallas_src>
import jax
import jax.numpy as jnp
from jax.experimental import pallas as pl
from jax.experimental.pallas import tpu as pltpu

EPS = 1e-3  # BatchNorm2d eps from the module


def se_matmul_stats_kernel(gate_ref, x_ref, w2_ref, y_ref, stats_ref):
    """Pass 1 (one grid step per batch sample).

    gate_ref : (Cmid, 1)    f32   sigmoid SE gate for this sample
    x_ref    : (Cmid, HW)   f32   NCHW activation slab (channels on sublanes)
    w2_ref   : (Cmid, Cout) bf16  1x1-conv weight, grid-invariant (VMEM-resident)
    y_ref    : (HW, Cout)   f32   un-normalized conv output (channels on lanes)
    stats_ref: (2, Cout)    f32   [sum(y), sum(y*y)] over this sample's tokens
    """
    # operator.mul: broadcast SE gate over the spatial axis, then feed the MXU
    # in bf16 (full-rate matmul) with f32 accumulation.
    gated = (x_ref[...] * gate_ref[...]).astype(jnp.bfloat16)        # (Cmid, HW)
    # conv2d261 (1x1, no bias) == transposed-LHS matmul:
    #   y[hw, o] = sum_c gated[c, hw] * w2[c, o]
    y = jax.lax.dot_general(
        gated, w2_ref[...],
        dimension_numbers=(((0,), (0,)), ((), ())),
        preferred_element_type=jnp.float32)                          # (HW, Cout)
    y_ref[...] = y
    # single-pass per-channel statistics for training-mode BatchNorm
    stats_ref[0:1, :] = jnp.sum(y, axis=0, keepdims=True)
    stats_ref[1:2, :] = jnp.sum(y * y, axis=0, keepdims=True)


def bn_apply_kernel(y_ref, scale_ref, shift_ref, o_ref):
    """Pass 2: fused BN affine, o = y * scale + shift (one FMA per element)."""
    o_ref[...] = y_ref[...] * scale_ref[...] + shift_ref[...]


def module_forward(x818, x815, w1, b1, w2, gamma, beta):
    """x818: [N, Cse, 1, 1], x815: [N, Cmid, H, W] (NCHW, like PyTorch)."""
    N, Cmid, H, W = x815.shape
    Cse = x818.shape[1]
    Cout = w2.shape[0]
    HW = H * W

    # conv2d260 + sigmoid52: a [N,Cse]x[Cse,Cmid] matvec (tiny) -- hoisted out
    # of the per-sample grid so it is computed exactly once.
    s = jax.nn.sigmoid(
        x818.reshape(N, Cse).astype(jnp.float32)
        @ jnp.transpose(w1.reshape(Cmid, Cse)).astype(jnp.float32)
        + b1.astype(jnp.float32))
    gate = s.reshape(N, Cmid, 1)

    # NCHW stays put -- only a free reshape of the trailing contiguous dims.
    x_cm = x815.reshape(N, Cmid, HW)

    # 1x1-conv weight as [Cmid, Cout] bf16, resident across the grid.
    w2_k = jnp.transpose(w2.reshape(Cout, Cmid)).astype(jnp.bfloat16)

    y_raw, stats = pl.pallas_call(
        se_matmul_stats_kernel,
        grid=(N,),
        in_specs=[
            pl.BlockSpec((None, Cmid, 1), lambda n: (n, 0, 0)),    # SE gate
            pl.BlockSpec((None, Cmid, HW), lambda n: (n, 0, 0)),   # activations
            pl.BlockSpec((Cmid, Cout), lambda n: (0, 0)),          # w2 (invariant)
        ],
        out_specs=[
            pl.BlockSpec((None, HW, Cout), lambda n: (n, 0, 0)),   # y (un-normalized)
            pl.BlockSpec((None, 2, Cout), lambda n: (n, 0, 0)),    # per-sample stats
        ],
        out_shape=[
            jax.ShapeDtypeStruct((N, HW, Cout), jnp.float32),
            jax.ShapeDtypeStruct((N, 2, Cout), jnp.float32),
        ],
        compiler_params=pltpu.CompilerParams(
            dimension_semantics=("parallel",),
            vmem_limit_bytes=64 * 1024 * 1024),
    )(gate, x_cm, w2_k)

    # batchnorm2d155, training mode: batch statistics over N*H*W (biased var),
    # folded into one per-channel scale/shift ([Cout]-sized math, plain JAX).
    # TODO(synk): running_mean/running_var momentum updates are a training-time
    # buffer side effect and are not materialized here (forward output is unaffected).
    cnt = jnp.float32(N * HW)
    total = jnp.sum(stats[:, 0, :], axis=0)
    total_sq = jnp.sum(stats[:, 1, :], axis=0)
    mean = total / cnt
    var = total_sq / cnt - mean * mean
    inv = jax.lax.rsqrt(var + EPS)
    scale = (gamma * inv).reshape(1, Cout).astype(jnp.float32)
    shift = (beta - mean * gamma * inv).reshape(1, Cout).astype(jnp.float32)

    out_tok = pl.pallas_call(
        bn_apply_kernel,
        grid=(N,),
        in_specs=[
            pl.BlockSpec((None, HW, Cout), lambda n: (n, 0, 0)),
            pl.BlockSpec((1, Cout), lambda n: (0, 0)),
            pl.BlockSpec((1, Cout), lambda n: (0, 0)),
        ],
        out_specs=pl.BlockSpec((None, HW, Cout), lambda n: (n, 0, 0)),
        out_shape=jax.ShapeDtypeStruct((N, HW, Cout), jnp.float32),
        input_output_aliases={0: 0},   # normalize y in place, no extra HBM buffer
        compiler_params=pltpu.CompilerParams(
            dimension_semantics=("parallel",)),
    )(y_raw, scale, shift)

    # back to NCHW (small: only Cout channels, done once on the output)
    return jnp.transpose(out_tok, (0, 2, 1)).reshape(N, Cout, H, W)


def reference_forward(x818, x815, w1, b1, w2, gamma, beta):
    """Pure-JAX f32 reference with identical semantics (for verification)."""
    N, Cmid, H, W = x815.shape
    Cse = x818.shape[1]
    Cout = w2.shape[0]
    se = jnp.einsum('oc,nc->no', w1.reshape(Cmid, Cse), x818.reshape(N, Cse)) + b1
    se = jax.nn.sigmoid(se)[:, :, None, None]                     # [N,Cmid,1,1]
    x = se * x815                                                 # [N,Cmid,H,W]
    y = jnp.einsum('oc,nchw->nohw', w2.reshape(Cout, Cmid), x)    # [N,Cout,H,W]
    mean = jnp.mean(y, axis=(0, 2, 3), keepdims=True)
    var = jnp.mean((y - mean) ** 2, axis=(0, 2, 3), keepdims=True)
    return (y - mean) / jnp.sqrt(var + EPS) * gamma[None, :, None, None] \
        + beta[None, :, None, None]


if __name__ == "__main__":
    # small shapes consistent with the module (orig: Cse=160, Cmid=3840,
    # Cout=640, 7x7 spatial, N=1) -- keep the 7x7 spatial, shrink channels.
    N, Cse, Cmid, Cout, H, W = 2, 32, 256, 128, 7, 7

    key = jax.random.PRNGKey(0)
    k1, k2, k3, k4, k5, k6, k7 = jax.random.split(key, 7)

    x818 = jax.random.normal(k1, (N, Cse, 1, 1), jnp.float32)     # SE squeeze input
    x815 = jax.random.normal(k2, (N, Cmid, H, W), jnp.float32)    # main activation

    w1 = 0.1 * jax.random.normal(k3, (Cmid, Cse, 1, 1), jnp.float32)   # conv2d260 weight
    b1 = 0.1 * jax.random.normal(k4, (Cmid,), jnp.float32)             # conv2d260 bias
    w2 = 0.1 * jax.random.normal(k5, (Cout, Cmid, 1, 1), jnp.float32)  # conv2d261 weight
    gamma = 1.0 + 0.1 * jax.random.normal(k6, (Cout,), jnp.float32)    # BN weight
    beta = 0.1 * jax.random.normal(k7, (Cout,), jnp.float32)           # BN bias

    fwd = jax.jit(module_forward)
    out = fwd(x818, x815, w1, b1, w2, gamma, beta)
    jax.block_until_ready(out)

    ref = reference_forward(x818, x815, w1, b1, w2, gamma, beta)
    assert out.shape == (N, Cout, H, W)
    # tolerance relaxed vs pure-f32 reference: the main matmul intentionally
    # runs the MXU in bf16 (f32 accumulation); BN re-normalizes afterwards.
    max_err = float(jnp.max(jnp.abs(out - ref)))
    assert jnp.allclose(out, ref, atol=3e-2, rtol=3e-2), f"max abs err {max_err}"

    print("KERNEL_OK")
</pallas_src>

<mosaic_0001>
module attributes {stable_mosaic.version = 11 : i64} {
  func.func @se_matmul_stats_kernel(%arg0: i32, %arg1: memref<1x256x1xf32, #tpu.memory_space<vmem>>, %arg2: memref<1x256x49xf32, #tpu.memory_space<vmem>>, %arg3: memref<256x128xbf16, #tpu.memory_space<vmem>>, %arg4: memref<1x49x128xf32, #tpu.memory_space<vmem>>, %arg5: memref<1x2x128xf32, #tpu.memory_space<vmem>>) attributes {dimension_semantics = [#tpu.dimension_semantics<parallel>], iteration_bounds = array<i64: 2>, scalar_prefetch = 0 : i64, scratch_operands = 0 : i64, tpu.core_type = #tpu.core_type<tc>, window_params = [{transform_indices = @transform_0, window_bounds = array<i64: 1, 256, 1>}, {transform_indices = @transform_1, window_bounds = array<i64: 1, 256, 49>}, {pipeline_mode = #tpu.pipeline_mode<synchronous>, transform_indices = @transform_2, window_bounds = array<i64: 256, 128>}, {transform_indices = @transform_3, window_bounds = array<i64: 1, 49, 128>}, {transform_indices = @transform_4, window_bounds = array<i64: 1, 2, 128>}]} {
    %c0 = arith.constant 0 : index
    %c0_0 = arith.constant 0 : index
    %c0_1 = arith.constant 0 : index
    %0 = vector.load %arg2[%c0, %c0_0, %c0_1] : memref<1x256x49xf32, #tpu.memory_space<vmem>>, vector<1x256x49xf32>
    %1 = vector.shape_cast %0 : vector<1x256x49xf32> to vector<256x49xf32>
    %c0_2 = arith.constant 0 : index
    %c0_3 = arith.constant 0 : index
    %c0_4 = arith.constant 0 : index
    %2 = vector.load %arg1[%c0_2, %c0_3, %c0_4] : memref<1x256x1xf32, #tpu.memory_space<vmem>>, vector<1x256x1xf32>
    %3 = vector.shape_cast %2 : vector<1x256x1xf32> to vector<256x1xf32>
    %4 = vector.broadcast %3 : vector<256x1xf32> to vector<256x49xf32>
    %5 = arith.mulf %1, %4 : vector<256x49xf32>
    %6 = arith.truncf %5 : vector<256x49xf32> to vector<256x49xbf16>
    %c0_5 = arith.constant 0 : index
    %c0_6 = arith.constant 0 : index
    %7 = vector.load %arg3[%c0_5, %c0_6] : memref<256x128xbf16, #tpu.memory_space<vmem>>, vector<256x128xbf16>
    %cst = arith.constant dense<0.000000e+00> : vector<49x128xf32>
    %8 = tpu.matmul %6, %7, %cst {dimension_numbers = #tpu.dot_dimension_numbers<[0], [0], [1], [1], [0, 1, 1, 1], [], []>} : vector<256x49xbf16>, vector<256x128xbf16>, vector<49x128xf32> -> vector<49x128xf32>
    %c0_7 = arith.constant 0 : index
    %c0_8 = arith.constant 0 : index
    %c0_9 = arith.constant 0 : index
    %9 = vector.load %arg4[%c0_7, %c0_8, %c0_9] : memref<1x49x128xf32, #tpu.memory_space<vmem>>, vector<1x49x128xf32>
    %10 = vector.shape_cast %9 : vector<1x49x128xf32> to vector<49x128xf32>
    %11 = vector.shape_cast %8 : vector<49x128xf32> to vector<1x49x128xf32>
    tpu.vector_store %arg4[%c0_7, %c0_8, %c0_9], %11 {strides = array<i32>} : memref<1x49x128xf32, #tpu.memory_space<vmem>>, vector<1x49x128xf32>,
    %cst_10 = arith.constant dense<0.000000e+00> : vector<128xf32>
    %12 = vector.multi_reduction <add>, %8, %cst_10 [0] : vector<49x128xf32> to vector<128xf32>
    %13 = vector.shape_cast %12 : vector<128xf32> to vector<1x128xf32>
    %c0_11 = arith.constant 0 : index
    %c0_12 = arith.constant 0 : index
    %c0_13 = arith.constant 0 : index
    %14 = vector.load %arg5[%c0_11, %c0_12, %c0_13] : memref<1x2x128xf32, #tpu.memory_space<vmem>>, vector<1x1x128xf32>
    %15 = vector.shape_cast %14 : vector<1x1x128xf32> to vector<1x128xf32>
    %16 = vector.shape_cast %13 : vector<1x128xf32> to vector<1x1x128xf32>
    tpu.vector_store %arg5[%c0_11, %c0_12, %c0_13], %16 {strides = array<i32>} : memref<1x2x128xf32, #tpu.memory_space<vmem>>, vector<1x1x128xf32>,
    %17 = arith.mulf %8, %8 : vector<49x128xf32>
    %cst_14 = arith.constant dense<0.000000e+00> : vector<128xf32>
    %18 = vector.multi_reduction <add>, %17, %cst_14 [0] : vector<49x128xf32> to vector<128xf32>
    %19 = vector.shape_cast %18 : vector<128xf32> to vector<1x128xf32>
    %c0_15 = arith.constant 0 : index
    %c1 = arith.constant 1 : index
    %c0_16 = arith.constant 0 : index
    %20 = vector.load %arg5[%c0_15, %c1, %c0_16] : memref<1x2x128xf32, #tpu.memory_space<vmem>>, vector<1x1x128xf32>
    %21 = vector.shape_cast %20 : vector<1x1x128xf32> to vector<1x128xf32>
    %22 = vector.shape_cast %19 : vector<1x128xf32> to vector<1x1x128xf32>
    tpu.vector_store %arg5[%c0_15, %c1, %c0_16], %22 {strides = array<i32>} : memref<1x2x128xf32, #tpu.memory_space<vmem>>, vector<1x1x128xf32>,
    return
  }
  func.func @transform_0(%arg0: i32) -> (i32, i32, i32) {
    %c0_i32 = arith.constant 0 : i32
    %c0_i32_0 = arith.constant 0 : i32
    %c0_i32_1 = arith.constant 0 : i32
    return %arg0, %c0_i32, %c0_i32_0 : i32, i32, i32
  }
  func.func @transform_1(%arg0: i32) -> (i32, i32, i32) {
    %c0_i32 = arith.constant 0 : i32
    %c0_i32_0 = arith.constant 0 : i32
    %c0_i32_1 = arith.constant 0 : i32
    return %arg0, %c0_i32, %c0_i32_0 : i32, i32, i32
  }
  func.func @transform_2(%arg0: i32) -> (i32, i32) {
    %c0_i32 = arith.constant 0 : i32
    %c0_i32_0 = arith.constant 0 : i32
    %c0_i32_1 = arith.constant 0 : i32
    return %c0_i32, %c0_i32_0 : i32, i32
  }
  func.func @transform_3(%arg0: i32) -> (i32, i32, i32) {
    %c0_i32 = arith.constant 0 : i32
    %c0_i32_0 = arith.constant 0 : i32
    %c0_i32_1 = arith.constant 0 : i32
    return %arg0, %c0_i32, %c0_i32_0 : i32, i32, i32
  }
  func.func @transform_4(%arg0: i32) -> (i32, i32, i32) {
    %c0_i32 = arith.constant 0 : i32
    %c0_i32_0 = arith.constant 0 : i32
    %c0_i32_1 = arith.constant 0 : i32
    return %arg0, %c0_i32, %c0_i32_0 : i32, i32, i32
  }
}

module attributes {stable_mosaic.version = 11 : i64} {
  func.func @bn_apply_kernel(%arg0: i32, %arg1: memref<1x49x128xf32, #tpu.memory_space<vmem>>, %arg2: memref<1x128xf32, #tpu.memory_space<vmem>>, %arg3: memref<1x128xf32, #tpu.memory_space<vmem>>, %arg4: memref<1x49x128xf32, #tpu.memory_space<vmem>>) attributes {dimension_semantics = [#tpu.dimension_semantics<parallel>], iteration_bounds = array<i64: 2>, scalar_prefetch = 0 : i64, scratch_operands = 0 : i64, tpu.core_type = #tpu.core_type<tc>, window_params = [{transform_indices = @transform_0, window_bounds = array<i64: 1, 49, 128>}, {pipeline_mode = #tpu.pipeline_mode<synchronous>, transform_indices = @transform_1, window_bounds = array<i64: 1, 128>}, {pipeline_mode = #tpu.pipeline_mode<synchronous>, transform_indices = @transform_2, window_bounds = array<i64: 1, 128>}, {transform_indices = @transform_3, window_bounds = array<i64: 1, 49, 128>}]} {
    %c0 = arith.constant 0 : index
    %c0_0 = arith.constant 0 : index
    %c0_1 = arith.constant 0 : index
    %0 = vector.load %arg1[%c0, %c0_0, %c0_1] : memref<1x49x128xf32, #tpu.memory_space<vmem>>, vector<1x49x128xf32>
    %1 = vector.shape_cast %0 : vector<1x49x128xf32> to vector<49x128xf32>
    %c0_2 = arith.constant 0 : index
    %c0_3 = arith.constant 0 : index
    %2 = vector.load %arg2[%c0_2, %c0_3] : memref<1x128xf32, #tpu.memory_space<vmem>>, vector<1x128xf32>
    %3 = vector.broadcast %2 : vector<1x128xf32> to vector<49x128xf32>
    %4 = arith.mulf %1, %3 : vector<49x128xf32>
    %c0_4 = arith.constant 0 : index
    %c0_5 = arith.constant 0 : index
    %5 = vector.load %arg3[%c0_4, %c0_5] : memref<1x128xf32, #tpu.memory_space<vmem>>, vector<1x128xf32>
    %6 = vector.broadcast %5 : vector<1x128xf32> to vector<49x128xf32>
    %7 = arith.addf %4, %6 : vector<49x128xf32>
    %c0_6 = arith.constant 0 : index
    %c0_7 = arith.constant 0 : index
    %c0_8 = arith.constant 0 : index
    %8 = vector.load %arg4[%c0_6, %c0_7, %c0_8] : memref<1x49x128xf32, #tpu.memory_space<vmem>>, vector<1x49x128xf32>
    %9 = vector.shape_cast %8 : vector<1x49x128xf32> to vector<49x128xf32>
    %10 = vector.shape_cast %7 : vector<49x128xf32> to vector<1x49x128xf32>
    tpu.vector_store %arg4[%c0_6, %c0_7, %c0_8], %10 {strides = array<i32>} : memref<1x49x128xf32, #tpu.memory_space<vmem>>, vector<1x49x128xf32>,
    return
  }
  func.func @transform_0(%arg0: i32) -> (i32, i32, i32) {
    %c0_i32 = arith.constant 0 : i32
    %c0_i32_0 = arith.constant 0 : i32
    %c0_i32_1 = arith.constant 0 : i32
    return %arg0, %c0_i32, %c0_i32_0 : i32, i32, i32
  }
  func.func @transform_1(%arg0: i32) -> (i32, i32) {
    %c0_i32 = arith.constant 0 : i32
    %c0_i32_0 = arith.constant 0 : i32
    %c0_i32_1 = arith.constant 0 : i32
    return %c0_i32, %c0_i32_0 : i32, i32
  }
  func.func @transform_2(%arg0: i32) -> (i32, i32) {
    %c0_i32 = arith.constant 0 : i32
    %c0_i32_0 = arith.constant 0 : i32
    %c0_i32_1 = arith.constant 0 : i32
    return %c0_i32, %c0_i32_0 : i32, i32
  }
  func.func @transform_3(%arg0: i32) -> (i32, i32, i32) {
    %c0_i32 = arith.constant 0 : i32
    %c0_i32_0 = arith.constant 0 : i32
    %c0_i32_1 = arith.constant 0 : i32
    return %arg0, %c0_i32, %c0_i32_0 : i32, i32, i32
  }
}

</mosaic_0001>

<bundles_post_ra>
// kernel: module_forward.3
= control target key start
LH: loop header
LB: loop body
LE: loop exit
PB: predicated region body
PF: predicated region fallthrough
CT: control target
= control target key end

     0   :  { %s316_s12 = smov 0   ;;  %s339_s0 = inlined_call_operand.vmem [shape: f32[2,49,128], index: 0, kind: input, shape index: {}, may-alias: {0,3}]   ;;  %s340_s1 = inlined_call_operand.vmem [shape: f32[1,128], index: 1, kind: input, shape index: {}]   ;;  %s341_s2 = inlined_call_operand.vmem [shape: f32[1,128], index: 2, kind: input, shape index: {}]   ;;  %s342_s3 = inlined_call_operand.vmem [shape: f32[2,49,128], index: 3, kind: output, shape index: {}, may-alias: {0,3}]  }
   0x1 LB: > { %s268_s13 = sadd.s32 4294967295, %s294_s12   ;;  %p272_p0 = scmp.ge.s32.totalorder %s294_s12, 1  ;;  %s294_s12 = sphi %s316_s12, %s13_s12  }
   0x2   : > { %p137_p1 = scmp.lt.s32.totalorder %s294_s12, 3 }
   0x4   : > { %p138_p2 = pnand %p272_p0, %p137_p1 }
   0x5   : > { %p161_p3 = scmp.lt.s32.totalorder (!%p138_p2), %s268_s13, 1 }
   0x6   : > { %141 = sbr.rel (%p138_p2) target bundleno = 24 (0x18), region = 32 }
   0xb   : > { %s344_s13 = smov (!%p161_p3, %s268_s13), 1  ;;  %v275_v0 = vld [vmem:[%s340_s1] ss:$0 sm:$0xff] }
   0xc   : > { %s279_s14 = smul.u32 56, %s344_s13  ;;  %v276_v1 = vld [vmem:[%s341_s2] ss:$0 sm:$0xff] }
   0xe   : > { %s165_s19 = scalar_lea.vmem %s339_s0, %s279_s14  ;;  %s170_s24 = scalar_lea.vmem %s342_s3, %s279_s14 }
   0xf   : > { %v171_v2 = vld [vmem:[%s165_s19] sm:$0xff]  ;;  %v172_v3 = vld [vmem:[%s165_s19 + $0x8] sm:$0xff]  ;;  %v173_v4 = vld [vmem:[%s165_s19 + $0x10] sm:$0xff] }
  0x10   : > { %v174_v5 = vld [vmem:[%s165_s19 + $0x18] sm:$0xff]  ;;  %v175_v6 = vld [vmem:[%s165_s19 + $0x20] sm:$0xff]  ;;  %v176_v7 = vld [vmem:[%s165_s19 + $0x28] sm:$0xff]  ;;  %v185_v8 = vmul.f32 %v275_v0, %v171_v2  ;;  %v186_v9 = vmul.f32 %v275_v0, %v172_v3  ;;  %v187_v10 = vmul.f32 %v275_v0, %v173_v4 }
  0x11   : > { %v177_v11 = vld [vmem:[%s165_s19 + $0x30] sm:$0x1]  ;;  %v188_v12 = vmul.f32 %v275_v0, %v174_v5  ;;  %v189_v13 = vmul.f32 %v275_v0, %v175_v6  ;;  %v190_v14 = vmul.f32 %v275_v0, %v176_v7 }
  0x12   : > { %v191_v15 = vmul.f32 %v275_v0, %v177_v11  ;;  %v199_v16 = vadd.f32 %v276_v1, %v185_v8  ;;  %v200_v17 = vadd.f32 %v276_v1, %v186_v9  ;;  %v201_v18 = vadd.f32 %v276_v1, %v187_v10 }
  0x13   : > { %v202_v19 = vadd.f32 %v276_v1, %v188_v12  ;;  %v203_v20 = vadd.f32 %v276_v1, %v189_v13  ;;  %v204_v21 = vadd.f32 %v276_v1, %v190_v14 }
  0x14   : > { %v205_v22 = vadd.f32 %v276_v1, %v191_v15  ;;  %206 = vst [vmem:[%s170_s24] sm:$0xff] %v199_v16  ;;  %207 = vst [vmem:[%s170_s24 + $0x8] sm:$0xff] %v200_v17 }
  0x15   : > { %208 = vst [vmem:[%s170_s24 + $0x10] sm:$0xff] %v201_v18  ;;  %209 = vst [vmem:[%s170_s24 + $0x18] sm:$0xff] %v202_v19 }
  0x16   : > { %210 = vst [vmem:[%s170_s24 + $0x20] sm:$0xff] %v203_v20  ;;  %211 = vst [vmem:[%s170_s24 + $0x28] sm:$0xff] %v204_v21 }
  0x17   : > { %212 = vst [vmem:[%s170_s24 + $0x30] sm:$0x1] %v205_v22 }
  0x18 PF: > { %s13_s12 = sadd.s32 1, %s294_s12  }
  0x19   : > { %p10_p4 = scmp.ge.s32.totalorder %s13_s12, 4  }
  0x1b   :  { %12 = sbr.rel (!%p10_p4) target bundleno = 1 (0x1), region = 62 }

// kernel: module_forward.2
= control target key start
LH: loop header
LB: loop body
LE: loop exit
PB: predicated region body
PF: predicated region fallthrough
CT: control target
= control target key end

     0   :  { %s1016_s15 = smov 0   ;;  %s1173_s0 = inlined_call_operand.vmem [shape: f32[2,256,1], index: 0, kind: input, shape index: {}]   ;;  %s1174_s1 = inlined_call_operand.vmem [shape: f32[2,256,49], index: 1, kind: input, shape index: {}]   ;;  %s1175_s2 = inlined_call_operand.vmem [shape: bf16[256,128], index: 2, kind: input, shape index: {}]   ;;  %s1176_s3 = inlined_call_operand.vmem [shape: f32[2,49,128], index: 3, kind: output, shape index: {0}]   ;;  %s1177_s4 = inlined_call_operand.vmem [shape: f32[2,2,128], index: 4, kind: output, shape index: {1}]  }
   0x1 LB: > { %s867_s16 = sadd.s32 4294967295, %s988_s15   ;;  %p871_p0 = scmp.ge.s32.totalorder %s988_s15, 1  ;;  %s988_s15 = sphi %s1016_s15, %s15_s15  }
   0x2   : > { %p175_p1 = scmp.lt.s32.totalorder %s988_s15, 3 }
   0x4   : > { %p176_p2 = pnand %p871_p0, %p175_p1 }
   0x5   : > { %p210_p3 = scmp.lt.s32.totalorder (!%p176_p2), %s867_s16, 1 }
   0x6   : > { %179 = sbr.rel (%p176_p2) target bundleno = 507 (0x1fb), region = 32 }
   0xb   : > { %v990_v0 = vmov 0   ;;  %s1179_s16 = smov (!%p210_p3, %s867_s16), 1  ;;  %v966_v33 = vld [vmem:[%s1175_s2 + $0x78] sm:$0xff]   ;;  %v968_v35 = vld [vmem:[%s1175_s2 + $0x70] sm:$0xff]   ;;  %v970_v37 = vld [vmem:[%s1175_s2 + $0x68] sm:$0xff]   ;;  %vm738_vm0 = vcmask 1040384  }
   0xc   : > { %965 = vset.pattern.permute.xlu1 %v990_v0  ;;  %964 = vset.pattern.permute.xlu0 %v990_v0  ;;  %s896_s17 = sshll.u32 %s1179_s16, 8  ;;  %v967_v34 = vld [vmem:[%s1175_s2 + $0x38] sm:$0xff]   ;;  %v969_v36 = vld [vmem:[%s1175_s2 + $0x30] sm:$0xff]   ;;  %v971_v38 = vld [vmem:[%s1175_s2 + $0x28] sm:$0xff]   ;;  %s877_s10 = sshll.u32 %s1179_s16, 1 }
   0xd   : > { %s1032_s20 = scalar_lea.vmem %s1173_s0, %s896_s17  ;;  %898 = vmatprep.subr.bf16.mxu0 %v966_v33  ;;  %938 = vmatprep.subr.bf16.mxu1 %v966_v33  ;;  %v972_v39 = vld [vmem:[%s1175_s2 + $0x60] sm:$0xff]   ;;  %v974_v41 = vld [vmem:[%s1175_s2 + $0x58] sm:$0xff]   ;;  %v976_v43 = vld [vmem:[%s1175_s2 + $0x50] sm:$0xff]   ;;  %s1119_s6 = scalar_lea.vmem %s1174_s1, %s896_s17 }
   0xe   : > { %v278_v1 = vld [vmem:[%s1032_s20 + $0x80] sm:$0xff]  ;;  %v279_v3 = vld [vmem:[%s1032_s20 + $0x88] sm:$0xff]  ;;  %v280_v5 = vld [vmem:[%s1032_s20 + $0x90] sm:$0xff]  ;;  %899 = vmatpush3.bf16.msra.mxu0 %v967_v34  ;;  %946 = vmatpush3.bf16.msra.mxu1 %v967_v34  ;;  %s954_s17 = smul.u32 56, %s1179_s16  ;;  %s228_s13 = scalar_lea.vmem %s1177_s4, %s877_s10 }
   0xf   : > { %v262_v2 = vld [vmem:[%s1032_s20] sm:$0xff]  ;;  %376 = vperm.xlu0 %964, %v278_v1   ;;  %v263_v4 = vld [vmem:[%s1032_s20 + $0x8] sm:$0xff]  ;;  %v281_v6 = vld [vmem:[%s1032_s20 + $0x98] sm:$0xff]  ;;  %900 = vmatprep.subr.bf16.mxu0 %v968_v35 }
  0x10   : > { %296 = vperm.xlu1 %965, %v262_v2   ;;  %v264_v7 = vld [vmem:[%s1032_s20 + $0x10] sm:$0xff]  ;;  %v265_v8 = vld [vmem:[%s1032_s20 + $0x18] sm:$0xff]  ;;  %v282_v9 = vld [vmem:[%s1032_s20 + $0xa0] sm:$0xff]  ;;  %939 = vmatprep.subr.bf16.mxu1 %v968_v35  ;;  %s1157_s9 = scalar_lea.vmem %s1176_s3, %s954_s17 }
  0x11   : > { %v283_v10 = vld [vmem:[%s1032_s20 + $0xa8] sm:$0xff]  ;;  %v266_v11 = vld [vmem:[%s1032_s20 + $0x20] sm:$0xff]  ;;  %v284_v13 = vld [vmem:[%s1032_s20 + $0xb0] sm:$0xff] }
  0x12   : > { %v267_v12 = vld [vmem:[%s1032_s20 + $0x28] sm:$0xff]  ;;  %v285_v14 = vld [vmem:[%s1032_s20 + $0xb8] sm:$0xff]  ;;  %v268_v15 = vld [vmem:[%s1032_s20 + $0x30] sm:$0xff]  ;;  %901 = vmatpush3.bf16.msra.mxu0 %v969_v36  ;;  %947 = vmatpush3.bf16.msra.mxu1 %v969_v36 }
  0x13   : > { %381 = vperm.xlu0 %964, %v279_v3   ;;  %v269_v16 = vld [vmem:[%s1032_s20 + $0x38] sm:$0xff]  ;;  %v286_v17 = vld [vmem:[%s1032_s20 + $0xc0] sm:$0xff]  ;;  %v287_v18 = vld [vmem:[%s1032_s20 + $0xc8] sm:$0xff]  ;;  %902 = vmatprep.subr.bf16.mxu0 %v970_v37 }
  0x14   : > { %301 = vperm.xlu1 %965, %v263_v4   ;;  %v270_v19 = vld [vmem:[%s1032_s20 + $0x40] sm:$0xff]  ;;  %v271_v20 = vld [vmem:[%s1032_s20 + $0x48] sm:$0xff]  ;;  %v288_v21 = vld [vmem:[%s1032_s20 + $0xd0] sm:$0xff]  ;;  %940 = vmatprep.subr.bf16.mxu1 %v970_v37 }
  0x15   : > { %v289_v22 = vld [vmem:[%s1032_s20 + $0xd8] sm:$0xff]  ;;  %v272_v23 = vld [vmem:[%s1032_s20 + $0x50] sm:$0xff]  ;;  %v290_v25 = vld [vmem:[%s1032_s20 + $0xe0] sm:$0xff] }
  0x16   : > { %v273_v24 = vld [vmem:[%s1032_s20 + $0x58] sm:$0xff]  ;;  %v291_v26 = vld [vmem:[%s1032_s20 + $0xe8] sm:$0xff]  ;;  %v274_v27 = vld [vmem:[%s1032_s20 + $0x60] sm:$0xff]  ;;  %903 = vmatpush3.bf16.msra.mxu0 %v971_v38  ;;  %948 = vmatpush3.bf16.msra.mxu1 %v971_v38 }
  0x17   : > { %386 = vperm.xlu0 %964, %v280_v5   ;;  %v275_v28 = vld [vmem:[%s1032_s20 + $0x68] sm:$0xff]  ;;  %v292_v29 = vld [vmem:[%s1032_s20 + $0xf0] sm:$0xff]  ;;  %v293_v30 = vld [vmem:[%s1032_s20 + $0xf8] sm:$0xff]  ;;  %904 = vmatprep.subr.bf16.mxu0 %v972_v39 }
  0x18   : > { %391 = vperm.xlu1 %965, %v281_v6   ;;  %v276_v31 = vld [vmem:[%s1032_s20 + $0x70] sm:$0xff]  ;;  %v277_v32 = vld [vmem:[%s1032_s20 + $0x78] sm:$0xff]  ;;  %v973_v40 = vld [vmem:[%s1175_s2 + $0x20] sm:$0xff]   ;;  %941 = vmatprep.subr.bf16.mxu1 %v972_v39 }
  0x19   : > { %v975_v42 = vld [vmem:[%s1175_s2 + $0x18] sm:$0xff]   ;;  %v977_v44 = vld [vmem:[%s1175_s2 + $0x10] sm:$0xff]   ;;  %v978_v45 = vld [vmem:[%s1175_s2 + $0x48] sm:$0xff]  }
  0x1a   : > { %905 = vmatpush3.bf16.msra.mxu0 %v973_v40  ;;  %949 = vmatpush3.bf16.msra.mxu1 %v973_v40  ;;  %v979_v46 = vld [vmem:[%s1175_s2 + $0x8] sm:$0xff]   ;;  %v980_v47 = vld [vmem:[%s1175_s2 + $0x40] sm:$0xff]   ;;  %v248_v61 = vld [vmem:[%s1119_s6 + $0x90] sm:$0xff] }
  0x1b   : > { %306 = vperm.xlu0 %964, %v264_v7   ;;  %906 = vmatprep.subr.bf16.mxu0 %v974_v41  ;;  %v981_v48 = vld [vmem:[%s1175_s2] sm:$0xff]   ;;  %v247_v53 = vld [vmem:[%s1119_s6 + $0x88] sm:$0xff]  ;;  %v249_v62 = vld [vmem:[%s1119_s6 + $0x98] sm:$0xff] }
  0x1c   : > { %311 = vperm.xlu1 %965, %v265_v8   ;;  %942 = vmatprep.subr.bf16.mxu1 %v974_v41  ;;  %v246_v51 = vld [vmem:[%s1119_s6 + $0x80] sm:$0xff]  ;;  %v231_v54 = vld [vmem:[%s1119_s6 + $0x8] sm:$0xff]  ;;  %v232_v5 = vld [vmem:[%s1119_s6 + $0x10] sm:$0xff] }
  0x1d   : > { %v230_v52 = vld [vmem:[%s1119_s6] sm:$0xff]  ;;  %v233_v6 = vld [vmem:[%s1119_s6 + $0x18] sm:$0xff]  ;;  %v236_v33 = vld [vmem:[%s1119_s6 + $0x30] sm:$0xff] }
  0x1e   : > { %907 = vmatpush3.bf16.msra.mxu0 %v975_v42  ;;  %950 = vmatpush3.bf16.msra.mxu1 %v975_v42  ;;  %v237_v34 = vld [vmem:[%s1119_s6 + $0x38] sm:$0xff]  ;;  %v254_v40 = vld [vmem:[%s1119_s6 + $0xc0] sm:$0xff]  ;;  %v255_v41 = vld [vmem:[%s1119_s6 + $0xc8] sm:$0xff] }
  0x1f   : > { %396 = vperm.xlu0 %964, %v282_v9   ;;  %908 = vmatprep.subr.bf16.mxu0 %v976_v43 }
  0x20   : > { %401 = vperm.xlu1 %965, %v283_v10   ;;  %943 = vmatprep.subr.bf16.mxu1 %v976_v43 }
  0x22   : > { %909 = vmatpush3.bf16.msra.mxu0 %v977_v44  ;;  %951 = vmatpush3.bf16.msra.mxu1 %v977_v44 }
  0x23   : > { %316 = vperm.xlu0 %964, %v266_v11   ;;  %910 = vmatprep.subr.bf16.mxu0 %v978_v45 }
  0x24   : > { %321 = vperm.xlu1 %965, %v267_v12   ;;  %944 = vmatprep.subr.bf16.mxu1 %v978_v45  ;;  %v250_v12 = vld [vmem:[%s1119_s6 + $0xa0] sm:$0xff] }
  0x26   : > { %911 = vmatpush3.bf16.msra.mxu0 %v979_v46  ;;  %952 = vmatpush3.bf16.msra.mxu1 %v979_v46 }
  0x27   : > { %406 = vperm.xlu0 %964, %v284_v13   ;;  %912 = vmatprep.subr.bf16.mxu0 %v980_v47  ;;  %v251_v13 = vld [vmem:[%s1119_s6 + $0xa8] sm:$0xff] }
  0x28   : > { %411 = vperm.xlu1 %965, %v285_v14   ;;  %945 = vmatprep.subr.bf16.mxu1 %v980_v47  ;;  %v238_v47 = vld [vmem:[%s1119_s6 + $0x40] sm:$0xff] }
  0x2a   : > { %913 = vmatpush3.bf16.msra.mxu0 %v981_v48  ;;  %953 = vmatpush3.bf16.msra.mxu1 %v981_v48  ;;  %v239_v48 = vld [vmem:[%s1119_s6 + $0x48] sm:$0xff] }
  0x2b   : > { %326 = vperm.xlu0 %964, %v268_v15  }
  0x2c   : > { %331 = vperm.xlu1 %965, %v269_v16  }
  0x2f   : > { %416 = vperm.xlu0 %964, %v286_v17  }
  0x30   : > { %421 = vperm.xlu1 %965, %v287_v18  }
  0x33   : > { %336 = vperm.xlu0 %964, %v270_v19   ;;  %v234_v19 = vld [vmem:[%s1119_s6 + $0x20] sm:$0xff] }
  0x34   : > { %341 = vperm.xlu1 %965, %v271_v20   ;;  %v235_v20 = vld [vmem:[%s1119_s6 + $0x28] sm:$0xff] }
  0x37   : > { %426 = vperm.xlu0 %964, %v288_v21  }
  0x38   : > { %431 = vperm.xlu1 %965, %v289_v22  }
  0x3b   : > { %346 = vperm.xlu0 %964, %v272_v23  }
  0x3c   : > { %351 = vperm.xlu1 %965, %v273_v24  }
  0x3f   : > { %436 = vperm.xlu0 %964, %v290_v25  }
  0x40   : > { %441 = vperm.xlu1 %965, %v291_v26   ;;  %v252_v26 = vld [vmem:[%s1119_s6 + $0xb0] sm:$0xff] }
  0x43   : > { %356 = vperm.xlu0 %964, %v274_v27   ;;  %v253_v27 = vld [vmem:[%s1119_s6 + $0xb8] sm:$0xff] }
  0x44   : > { %361 = vperm.xlu1 %965, %v275_v28  }
  0x47   : > { %446 = vperm.xlu0 %964, %v292_v29  }
  0x48   : > { %451 = vperm.xlu1 %965, %v293_v30  }
  0x4b   : > { %366 = vperm.xlu0 %964, %v276_v31  }
  0x4c   : > { %371 = vperm.xlu1 %965, %v277_v32  }
  0x8a   : > { %v377_v49 = vpop.permute.xlu0 %376 }
  0x8b   : > { %v297_v50 = vpop.permute.xlu1 %296  ;;  %v470_v57 = vmul.f32 %v377_v49, %v246_v51 }
  0x8c   : > { %v454_v58 = vmul.f32 %v297_v50, %v230_v52 }
  0x8e   : > { %v382_v55 = vpop.permute.xlu0 %381 }
  0x8f   : > { %v302_v56 = vpop.permute.xlu1 %301  ;;  %v471_v59 = vmul.f32 %v382_v55, %v247_v53  ;;  %v257_v55 = vld [vmem:[%s1119_s6 + $0xd8] sm:$0xff] }
  0x90   : > { %v455_v60 = vmul.f32 %v302_v56, %v231_v54  ;;  %v256_v54 = vld [vmem:[%s1119_s6 + $0xd0] sm:$0xff] }
  0x91   : > { %v494_v63 = vpack.c.bf16 %v471_v59, %v470_v57 }
  0x92   : > { %v486_v0 = vpack.c.bf16 %v455_v60, %v454_v58  ;;  %v387_v1 = vpop.permute.xlu0 %386 }
  0x93   : > { %v392_v2 = vpop.permute.xlu1 %391  ;;  %v472_v3 = vmul.f32 %v387_v1, %v248_v61  ;;  %550 = vxpose.xlu0.c.b16.start [1/8] (narrow) %v494_v63, 64  ;;  %v240_v61 = vld [vmem:[%s1119_s6 + $0x50] sm:$0xff] }
  0x94   : > { %v473_v4 = vmul.f32 %v392_v2, %v249_v62  ;;  %534 = vxpose.xlu1.c.b16.start [1/8] (narrow) %v486_v0, 64  ;;  %v241_v62 = vld [vmem:[%s1119_s6 + $0x58] sm:$0xff] }
  0x96   : > { %v495_v7 = vpack.c.bf16 %v473_v4, %v472_v3  ;;  %v307_v8 = vpop.permute.xlu0 %306  ;;  %v258_v4 = vld [vmem:[%s1119_s6 + $0xe0] sm:$0xff] }
  0x97   : > { %v312_v9 = vpop.permute.xlu1 %311  ;;  %v456_v10 = vmul.f32 %v307_v8, %v232_v5  ;;  %v259_v5 = vld [vmem:[%s1119_s6 + $0xe8] sm:$0xff] }
  0x98   : > { %v457_v11 = vmul.f32 %v312_v9, %v233_v6  ;;  %551 = vxpose.xlu0.c.b16.cont [2/8] (narrow) %v495_v7, 64 }
  0x9a   : > { %v487_v14 = vpack.c.bf16 %v457_v11, %v456_v10  ;;  %v397_v15 = vpop.permute.xlu0 %396  ;;  %v242_v11 = vld [vmem:[%s1119_s6 + $0x60] sm:$0xff] }
  0x9b   : > { %v402_v16 = vpop.permute.xlu1 %401  ;;  %v474_v17 = vmul.f32 %v397_v15, %v250_v12  ;;  %v243_v12 = vld [vmem:[%s1119_s6 + $0x68] sm:$0xff] }
  0x9c   : > { %v475_v18 = vmul.f32 %v402_v16, %v251_v13  ;;  %535 = vxpose.xlu1.c.b16.cont [2/8] (narrow) %v487_v14, 64 }
  0x9e   : > { %v496_v21 = vpack.c.bf16 %v475_v18, %v474_v17  ;;  %v317_v22 = vpop.permute.xlu0 %316  ;;  %v260_v18 = vld [vmem:[%s1119_s6 + $0xf0] sm:$0xff] }
  0x9f   : > { %v322_v23 = vpop.permute.xlu1 %321  ;;  %v458_v24 = vmul.f32 %v317_v22, %v234_v19  ;;  %v261_v19 = vld [vmem:[%s1119_s6 + $0xf8] sm:$0xff] }
  0xa0   : > { %v459_v25 = vmul.f32 %v322_v23, %v235_v20  ;;  %552 = vxpose.xlu0.c.b16.cont [3/8] (narrow) %v496_v21, 64 }
  0xa2   : > { %v488_v28 = vpack.c.bf16 %v459_v25, %v458_v24  ;;  %v407_v29 = vpop.permute.xlu0 %406  ;;  %v244_v25 = vld [vmem:[%s1119_s6 + $0x70] sm:$0xff] }
  0xa3   : > { %v412_v30 = vpop.permute.xlu1 %411  ;;  %v476_v31 = vmul.f32 %v407_v29, %v252_v26  ;;  %v245_v26 = vld [vmem:[%s1119_s6 + $0x78] sm:$0xff] }
  0xa4   : > { %v477_v32 = vmul.f32 %v412_v30, %v253_v27  ;;  %536 = vxpose.xlu1.c.b16.cont [3/8] (narrow) %v488_v28, 64 }
  0xa6   : > { %v497_v35 = vpack.c.bf16 %v477_v32, %v476_v31  ;;  %v327_v36 = vpop.permute.xlu0 %326 }
  0xa7   : > { %v332_v37 = vpop.permute.xlu1 %331  ;;  %v460_v38 = vmul.f32 %v327_v36, %v236_v33 }
  0xa8   : > { %v461_v39 = vmul.f32 %v332_v37, %v237_v34  ;;  %553 = vxpose.xlu0.c.b16.cont [4/8] (narrow) %v497_v35, 64 }
  0xaa   : > { %v489_v42 = vpack.c.bf16 %v461_v39, %v460_v38  ;;  %v417_v43 = vpop.permute.xlu0 %416 }
  0xab   : > { %v422_v44 = vpop.permute.xlu1 %421  ;;  %v478_v45 = vmul.f32 %v417_v43, %v254_v40 }
  0xac   : > { %v479_v46 = vmul.f32 %v422_v44, %v255_v41  ;;  %537 = vxpose.xlu1.c.b16.cont [4/8] (narrow) %v489_v42, 64 }
  0xae   : > { %v498_v49 = vpack.c.bf16 %v479_v46, %v478_v45  ;;  %v337_v50 = vpop.permute.xlu0 %336 }
  0xaf   : > { %v342_v51 = vpop.permute.xlu1 %341  ;;  %v462_v52 = vmul.f32 %v337_v50, %v238_v47 }
  0xb0   : > { %v463_v53 = vmul.f32 %v342_v51, %v239_v48  ;;  %554 = vxpose.xlu0.c.b16.cont [5/8] (narrow) %v498_v49, 64 }
  0xb2   : > { %v490_v56 = vpack.c.bf16 %v463_v53, %v462_v52  ;;  %v427_v57 = vpop.permute.xlu0 %426 }
  0xb3   : > { %v432_v58 = vpop.permute.xlu1 %431  ;;  %v480_v59 = vmul.f32 %v427_v57, %v256_v54 }
  0xb4   : > { %v481_v60 = vmul.f32 %v432_v58, %v257_v55  ;;  %538 = vxpose.xlu1.c.b16.cont [5/8] (narrow) %v490_v56, 64 }
  0xb6   : > { %v499_v63 = vpack.c.bf16 %v481_v60, %v480_v59  ;;  %v347_v0 = vpop.permute.xlu0 %346 }
  0xb7   : > { %v352_v1 = vpop.permute.xlu1 %351  ;;  %v464_v2 = vmul.f32 %v347_v0, %v240_v61 }
  0xb8   : > { %v465_v3 = vmul.f32 %v352_v1, %v241_v62  ;;  %555 = vxpose.xlu0.c.b16.cont [6/8] (narrow) %v499_v63, 64 }
  0xba   : > { %v491_v6 = vpack.c.bf16 %v465_v3, %v464_v2  ;;  %v437_v7 = vpop.permute.xlu0 %436 }
  0xbb   : > { %v442_v8 = vpop.permute.xlu1 %441  ;;  %v482_v9 = vmul.f32 %v437_v7, %v258_v4 }
  0xbc   : > { %v483_v10 = vmul.f32 %v442_v8, %v259_v5  ;;  %539 = vxpose.xlu1.c.b16.cont [6/8] (narrow) %v491_v6, 64 }
  0xbe   : > { %v500_v13 = vpack.c.bf16 %v483_v10, %v482_v9  ;;  %v357_v14 = vpop.permute.xlu0 %356 }
  0xbf   : > { %v362_v15 = vpop.permute.xlu1 %361  ;;  %v466_v16 = vmul.f32 %v357_v14, %v242_v11 }
  0xc0   : > { %v467_v17 = vmul.f32 %v362_v15, %v243_v12  ;;  %556 = vxpose.xlu0.c.b16.cont [7/8] (narrow) %v500_v13, 64 }
  0xc2   : > { %v492_v20 = vpack.c.bf16 %v467_v17, %v466_v16  ;;  %v447_v21 = vpop.permute.xlu0 %446 }
  0xc3   : > { %v452_v22 = vpop.permute.xlu1 %451  ;;  %v484_v23 = vmul.f32 %v447_v21, %v260_v18 }
  0xc4   : > { %v485_v24 = vmul.f32 %v452_v22, %v261_v19  ;;  %540 = vxpose.xlu1.c.b16.cont [7/8] (narrow) %v492_v20, 64 }
  0xc6   : > { %v501_v27 = vpack.c.bf16 %v485_v24, %v484_v23  ;;  %v367_v28 = vpop.permute.xlu0 %366 }
  0xc7   : > { %v372_v29 = vpop.permute.xlu1 %371  ;;  %v468_v30 = vmul.f32 %v367_v28, %v244_v25 }
  0xc8   : > { %v469_v31 = vmul.f32 %v372_v29, %v245_v26  ;;  %557 = vxpose.xlu0.c.b16.end [8/8] (narrow) %v501_v27, 64 }
  0xca   : > { %v493_v32 = vpack.c.bf16 %v469_v31, %v468_v30 }
  0xcc   : > { %541 = vxpose.xlu1.c.b16.end [8/8] (narrow) %v493_v32, 64 }
 0x10e   : > { %v558_v33 = vpop.trf.xlu0 }
 0x10f   : > { %694 = vmatprep.mubr.bf16.mxu0 %v558_v33 }
 0x112   : > { %v542_v34 = vpop.trf.xlu1  ;;  %v559_v35 = vpop.trf.xlu0 }
 0x113   : > { %695 = vmatmul.mubr.bf16.vlgmr.msra.gmra.mxu0 %v542_v34 }
 0x114   : > { %702 = vmatprep.mubr.bf16.mxu0 %v559_v35 }
 0x116   : > { %v543_v36 = vpop.trf.xlu1  ;;  %v560_v37 = vpop.trf.xlu0 }
 0x117   : > { %710 = vmatprep.mubr.bf16.mxu1 %v560_v37 }
 0x11a   : > { %v544_v38 = vpop.trf.xlu1  ;;  %v561_v39 = vpop.trf.xlu0 }
 0x11b   : > { %703 = vmatmul.mubr.bf16.gmra.mxu0 %v543_v36  ;;  %711 = vmatmul.mubr.bf16.vlgmr.msra.gmra.mxu1 %v544_v38 }
 0x11c   : > { %718 = vmatprep.mubr.bf16.mxu1 %v561_v39 }
 0x11e   : > { %v545_v40 = vpop.trf.xlu1 }
 0x123   : > { %719 = vmatmul.mubr.bf16.gmra.mxu1 %v545_v40 }
 0x1d3   : > { %v914_v41 = vpop.f32.mrf.mxu0 }
 0x1d5   : > { %v915_v42 = vpop.f32.mrf.mxu0 }
 0x1d6   : > { %v916_v43 = vadd.f32 %v915_v42, %v914_v41 }
 0x1d7   : > { %v917_v44 = vpop.f32.mrf.mxu0 }
 0x1d8   : > { %726 = vst [vmem:[%s1157_s9] sm:$0xff] %v916_v43  ;;  %v748_v56 = vmul.f32 %v916_v43, %v916_v43 }
 0x1d9   : > { %v918_v45 = vpop.f32.mrf.mxu0 }
 0x1da   : > { %v919_v46 = vadd.f32 %v918_v45, %v917_v44 }
 0x1db   : > { %v920_v47 = vpop.f32.mrf.mxu0  ;;  %v926_v48 = vpop.f32.mrf.mxu1 }
 0x1dc   : > { %727 = vst [vmem:[%s1157_s9 + $0x8] sm:$0xff] %v919_v46  ;;  %v749_v51 = vmul.f32 %v919_v46, %v919_v46  ;;  %v733_v57 = vadd.f32 %v919_v46, %v916_v43 }
 0x1dd   : > { %v921_v49 = vpop.f32.mrf.mxu0  ;;  %v927_v50 = vpop.f32.mrf.mxu1 }
 0x1de   : > { %v922_v52 = vadd.f32 %v921_v49, %v920_v47  ;;  %v928_v53 = vadd.f32 %v927_v50, %v926_v48  ;;  %v755_v61 = vadd.f32 %v749_v51, %v748_v56 }
 0x1df   : > { %v923_v54 = vpop.f32.mrf.mxu0  ;;  %v929_v55 = vpop.f32.mrf.mxu1 }
 0x1e0   : > { %728 = vst [vmem:[%s1157_s9 + $0x10] sm:$0xff] %v922_v52  ;;  %v750_v58 = vmul.f32 %v922_v52, %v922_v52  ;;  %730 = vst [vmem:[%s1157_s9 + $0x20] sm:$0xff] %v928_v53  ;;  %v734_v62 = vadd.f32 %v922_v52, %v733_v57  ;;  %v752_v6 = vmul.f32 %v928_v53, %v928_v53 }
 0x1e1   : > { %v924_v59 = vpop.f32.mrf.mxu0  ;;  %v930_v60 = vpop.f32.mrf.mxu1 }
 0x1e2   : > { %v925_v63 = vadd.f32 %v924_v59, %v923_v54  ;;  %v931_v0 = vadd.f32 %v930_v60, %v929_v55  ;;  %v756_v2 = vadd.f32 %v755_v61, %v750_v58 }
 0x1e3   : > { %v932_v1 = vpop.f32.mrf.mxu1 }
 0x1e4   : > { %729 = vst [vmem:[%s1157_s9 + $0x18] sm:$0xff] %v925_v63  ;;  %v735_v3 = vadd.f32 %v925_v63, %v734_v62  ;;  %v751_v4 = vmul.f32 %v925_v63, %v925_v63  ;;  %731 = vst [vmem:[%s1157_s9 + $0x28] sm:$0xff] %v931_v0  ;;  %v753_v10 = vmul.f32 %v931_v0, %v931_v0 }
 0x1e5   : > { %v933_v5 = vpop.f32.mrf.mxu1 }
 0x1e6   : > { %v757_v7 = vadd.f32 %v756_v2, %v751_v4  ;;  %v736_v8 = vadd.f32 %v928_v53, %v735_v3  ;;  %v934_v9 = vadd.f32 %v933_v5, %v932_v1 }
 0x1e7   : > { %v935_v11 = vpop.f32.mrf.mxu1 }
 0x1e8   : > { %v737_v12 = vadd.f32 %v931_v0, %v736_v8  ;;  %v758_v13 = vadd.f32 %v757_v7, %v752_v6  ;;  %732 = vst [vmem:[%s1157_s9 + $0x30] sm:$0x1] %v934_v9  ;;  %v739_v14 = vsel %vm738_vm0, %v934_v9, 0.0  ;;  %v754_v15 = vmul.f32 %v934_v9, %v934_v9 }
 0x1e9   : > { %v936_v16 = vpop.f32.mrf.mxu1 }
 0x1ea   : > { %v759_v17 = vadd.f32 %v758_v13, %v753_v10  ;;  %v740_v18 = vadd.f32 %v739_v14, %v737_v12  ;;  %v760_v19 = vsel %vm738_vm0, %v754_v15, 0.0 }
 0x1ec   : > { %v741_v20 = vrot.slane %v740_v18, 4  ;;  %v761_v21 = vadd.f32 %v760_v19, %v759_v17 }
 0x1ee   : > { %v742_v22 = vadd.f32 %v741_v20, %v740_v18  ;;  %v762_v23 = vrot.slane %v761_v21, 4 }
 0x1f0   : > { %v743_v24 = vrot.slane %v742_v22, 2  ;;  %v763_v25 = vadd.f32 %v762_v23, %v761_v21 }
 0x1f2   : > { %v744_v26 = vadd.f32 %v743_v24, %v742_v22  ;;  %v764_v27 = vrot.slane %v763_v25, 2 }
 0x1f4   : > { %v745_v28 = vrot.slane %v744_v26, 1  ;;  %v765_v29 = vadd.f32 %v764_v27, %v763_v25 }
 0x1f6   : > { %v746_v30 = vadd.f32 %v745_v28, %v744_v26  ;;  %v766_v31 = vrot.slane %v765_v29, 1 }
 0x1f8   : > { %747 = vst [vmem:[%s228_s13] sm:$0x1] %v746_v30  ;;  %v767_v32 = vadd.f32 %v766_v31, %v765_v29 }
 0x1fa   : > { %768 = vst [vmem:[%s228_s13 + $0x1] sm:$0x1] %v767_v32 }
 0x1fb PF: > { %s15_s15 = sadd.s32 1, %s988_s15  }
 0x1fc   : > { %p12_p4 = scmp.ge.s32.totalorder %s15_s15, 4  }
 0x1fe   :  { %14 = sbr.rel (!%p12_p4) target bundleno = 1 (0x1), region = 77 }

</bundles_post_ra>
